<compile_context>
chip_gen: v7x
topology: tpu7x:2x2x1
jax: 0.10.0
libtpu: 0.0.40
codegen_flags: <defaults>
</compile_context>

<pallas_src>
import functools

import jax
import jax.numpy as jnp
from jax.experimental import pallas as pl
from jax.experimental.pallas import tpu as pltpu


def mlp_kernel(x_ref, w1_ref, b1_ref, w2_ref, b2_ref, o_ref):
    # hidden = relu(x @ W1 + b1); out = hidden @ W2 + b2
    # f32 everywhere: K=16/32 is <13% of one MXU pass, so bf16 inputs buy
    # nothing here; bias+ReLU stay f32 (v5e has no bf16 VALU path).
    x = x_ref[...]
    h = jnp.dot(x, w1_ref[...], preferred_element_type=jnp.float32)
    h = jnp.maximum(h + b1_ref[...], 0.0)   # b1 is [1, n_hidden], broadcasts
    o = jnp.dot(h, w2_ref[...], preferred_element_type=jnp.float32)
    o_ref[...] = (o + b2_ref[...]).astype(o_ref.dtype)


def _cost_estimate(n, f, h, o):
    return pl.CostEstimate(
        flops=2 * n * f * h + 2 * n * h * o,
        transcendentals=0,
        bytes_accessed=4 * (n * f + f * h + h + h * o + o + n * o),
    )


def net_forward(x, w1, b1, w2, b2, *, block_rows=256):
    """relu(x @ w1 + b1) @ w2 + b2 via a Pallas TPU kernel."""
    n, f = x.shape
    hdim = w1.shape[1]
    odim = w2.shape[1]
    b1_2d = b1.reshape(1, hdim)
    b2_2d = b2.reshape(1, odim)
    cost = _cost_estimate(n, f, hdim, odim)

    if n <= block_rows:
        # ---- Small-batch path: single block, no grid, no pipeline machinery.
        return pl.pallas_call(
            mlp_kernel,
            out_shape=jax.ShapeDtypeStruct((n, odim), jnp.float32),
            in_specs=[pl.BlockSpec(memory_space=pltpu.MemorySpace.VMEM)] * 5,
            out_specs=pl.BlockSpec(memory_space=pltpu.MemorySpace.VMEM),
            cost_estimate=cost,
        )(x, w1, b1_2d, w2, b2_2d)

    # ---- Batched path: stream row-tiles of x through a parallel grid axis,
    #      weights grid-resident (same block every step -> DMA'd once).
    n_pad = pl.cdiv(n, block_rows) * block_rows
    if n_pad != n:
        x = jnp.pad(x, ((0, n_pad - n), (0, 0)))

    out = pl.pallas_call(
        mlp_kernel,
        out_shape=jax.ShapeDtypeStruct((n_pad, odim), jnp.float32),
        grid=(n_pad // block_rows,),
        in_specs=[
            pl.BlockSpec((block_rows, f), lambda i: (i, 0)),   # x: advances
            pl.BlockSpec((f, hdim), lambda i: (0, 0)),         # W1: resident
            pl.BlockSpec((1, hdim), lambda i: (0, 0)),         # b1: resident
            pl.BlockSpec((hdim, odim), lambda i: (0, 0)),      # W2: resident
            pl.BlockSpec((1, odim), lambda i: (0, 0)),         # b2: resident
        ],
        out_specs=pl.BlockSpec((block_rows, odim), lambda i: (i, 0)),
        compiler_params=pltpu.CompilerParams(
            dimension_semantics=("parallel",),  # splits across both TCs on v7x
        ),
        cost_estimate=cost,
    )(x, w1, b1_2d, w2, b2_2d)
    return out[:n]


def reference_forward(x, w1, b1, w2, b2):
    h = jnp.maximum(x @ w1 + b1, 0.0)
    return h @ w2 + b2


if __name__ == "__main__":
    # Shapes implied by the module: Linear(n_feature, n_hidden) -> Linear(n_hidden, n_output)
    n_feature, n_hidden, n_output = 16, 32, 8

    key = jax.random.PRNGKey(0)
    kx, kw1, kb1, kw2, kb2, kxb = jax.random.split(key, 6)

    # PyTorch Linear weight is [out, in]; we store it transposed as [in, out].
    w1 = jax.random.normal(kw1, (n_feature, n_hidden), dtype=jnp.float32) * 0.1
    b1 = jax.random.normal(kb1, (n_hidden,), dtype=jnp.float32) * 0.1
    w2 = jax.random.normal(kw2, (n_hidden, n_output), dtype=jnp.float32) * 0.1
    b2 = jax.random.normal(kb2, (n_output,), dtype=jnp.float32) * 0.1

    # 1) Small batch -> single-block, grid-free path.
    x_small = jax.random.normal(kx, (8, n_feature), dtype=jnp.float32)
    out_small = jax.block_until_ready(net_forward(x_small, w1, b1, w2, b2))
    ref_small = reference_forward(x_small, w1, b1, w2, b2)
    assert out_small.shape == (8, n_output)
    assert jnp.allclose(out_small, ref_small, atol=1e-5, rtol=1e-5)

    # 2) Larger batch -> tiled "parallel" grid path with resident weights.
    x_big = jax.random.normal(kxb, (384, n_feature), dtype=jnp.float32)
    out_big = jax.block_until_ready(
        net_forward(x_big, w1, b1, w2, b2, block_rows=128)
    )
    ref_big = reference_forward(x_big, w1, b1, w2, b2)
    assert out_big.shape == (384, n_output)
    assert jnp.allclose(out_big, ref_big, atol=1e-5, rtol=1e-5)

    print("KERNEL_OK")
</pallas_src>

<mosaic_0001>
module attributes {stable_mosaic.version = 11 : i64} {
  func.func @mlp_kernel(%arg0: memref<8x16xf32, #tpu.memory_space<vmem>>, %arg1: memref<16x32xf32, #tpu.memory_space<vmem>>, %arg2: memref<1x32xf32, #tpu.memory_space<vmem>>, %arg3: memref<32x8xf32, #tpu.memory_space<vmem>>, %arg4: memref<1x8xf32, #tpu.memory_space<vmem>>, %arg5: memref<8x8xf32, #tpu.memory_space<vmem>>) attributes {dimension_semantics = [], scalar_prefetch = 0 : i64, scratch_operands = 0 : i64, tpu.core_type = #tpu.core_type<tc>} {
    %c0 = arith.constant 0 : index
    %c0_0 = arith.constant 0 : index
    %0 = vector.load %arg0[%c0, %c0_0] : memref<8x16xf32, #tpu.memory_space<vmem>>, vector<8x16xf32>
    %c0_1 = arith.constant 0 : index
    %c0_2 = arith.constant 0 : index
    %1 = vector.load %arg1[%c0_1, %c0_2] : memref<16x32xf32, #tpu.memory_space<vmem>>, vector<16x32xf32>
    %cst = arith.constant dense<0.000000e+00> : vector<8x32xf32>
    %2 = tpu.matmul %0, %1, %cst {dimension_numbers = #tpu.dot_dimension_numbers<[1], [0], [0], [1], [0, 0, 1, 1], [], []>} : vector<8x16xf32>, vector<16x32xf32>, vector<8x32xf32> -> vector<8x32xf32>
    %c0_3 = arith.constant 0 : index
    %c0_4 = arith.constant 0 : index
    %3 = vector.load %arg2[%c0_3, %c0_4] : memref<1x32xf32, #tpu.memory_space<vmem>>, vector<1x32xf32>
    %4 = vector.broadcast %3 : vector<1x32xf32> to vector<8x32xf32>
    %5 = arith.addf %2, %4 : vector<8x32xf32>
    %cst_5 = arith.constant 0.000000e+00 : f32
    %6 = vector.broadcast %cst_5 : f32 to vector<8x32xf32>
    %7 = arith.maximumf %5, %6 : vector<8x32xf32>
    %c0_6 = arith.constant 0 : index
    %c0_7 = arith.constant 0 : index
    %8 = vector.load %arg3[%c0_6, %c0_7] : memref<32x8xf32, #tpu.memory_space<vmem>>, vector<32x8xf32>
    %cst_8 = arith.constant dense<0.000000e+00> : vector<8x8xf32>
    %9 = tpu.matmul %7, %8, %cst_8 {dimension_numbers = #tpu.dot_dimension_numbers<[1], [0], [0], [1], [0, 0, 1, 1], [], []>} : vector<8x32xf32>, vector<32x8xf32>, vector<8x8xf32> -> vector<8x8xf32>
    %c0_9 = arith.constant 0 : index
    %c0_10 = arith.constant 0 : index
    %10 = vector.load %arg4[%c0_9, %c0_10] : memref<1x8xf32, #tpu.memory_space<vmem>>, vector<1x8xf32>
    %11 = vector.broadcast %10 : vector<1x8xf32> to vector<8x8xf32>
    %12 = arith.addf %9, %11 : vector<8x8xf32>
    %c0_11 = arith.constant 0 : index
    %c0_12 = arith.constant 0 : index
    %13 = vector.load %arg5[%c0_11, %c0_12] : memref<8x8xf32, #tpu.memory_space<vmem>>, vector<8x8xf32>
    tpu.vector_store %arg5[%c0_11, %c0_12], %12 {strides = array<i32>} : memref<8x8xf32, #tpu.memory_space<vmem>>, vector<8x8xf32>,
    return
  }
}

</mosaic_0001>

<bundles_post_ra>
// kernel: tpu_custom_call.1
= control target key start
LH: loop header
LB: loop body
LE: loop exit
PB: predicated region body
PF: predicated region fallthrough
CT: control target
= control target key end

     0   :  { %v274_v2 = vmov 0.0|0.0   ;;  %vm275_vm0 = vmmov 0   ;;  %v276_v4 = vmov 0.0   ;;  %s347_s0 = inlined_call_operand.vmem [shape: f32[8,16], index: 0, kind: input, shape index: {}]   ;;  %s348_s1 = inlined_call_operand.vmem [shape: f32[16,32], index: 1, kind: input, shape index: {}]   ;;  %s349_s2 = inlined_call_operand.vmem [shape: f32[1,32], index: 2, kind: input, shape index: {}]   ;;  %s350_s3 = inlined_call_operand.vmem [shape: f32[32,8], index: 3, kind: input, shape index: {}]   ;;  %s351_s4 = inlined_call_operand.vmem [shape: f32[1,8], index: 4, kind: input, shape index: {}]   ;;  %s352_s5 = inlined_call_operand.hbm [shape: f32[8,8], index: 5, kind: output, shape index: {}]  }
   0x1   :  { %v22_v0 = vld [vmem:[%s348_s1] sm:$0xff]  ;;  %v23_v1 = vld [vmem:[%s348_s1 + $0x8] sm:$0xff]  ;;  %237 = vmatprep.subr.bf16.mxu0 %v274_v2  ;;  %223 = vmatprep.mubr.msk.f32.mxu0 %vm275_vm0, %v276_v4 }
   0x2   :  { %v238_v3 = vpack.c.bf16 %v23_v1, %v22_v0  ;;  %v106_v5 = vld [vmem:[%s350_s3] sm:$0xff]  ;;  %v107_v6 = vld [vmem:[%s350_s3 + $0x8] sm:$0xff]  ;;  %240 = vmatprep.subr.bf16.mxu1 %v274_v2  ;;  %234 = vmatprep.mubr.msk.f32.mxu1 %vm275_vm0, %v276_v4 }
   0x3   :  { %v241_v7 = vpack.c.bf16 %v107_v6, %v106_v5 }
   0x4   :  { %10 = vsyncpa [#allocation3], 0  ;;  %239 = vmatpush3.bf16.msra.mxu0 %v238_v3  ;;  %v21_v8 = vld [vmem:[%s347_s0] sm:$0xff]  ;;  %vm31_vm1 = vcmask 130048   ;;  %v108_v9 = vld [vmem:[%s350_s3 + $0x10] sm:$0xff]  ;;  %vm117_vm2 = vcmask 261120  }
   0x5   :  { %242 = vmatpush3.bf16.msra.mxu1 %v241_v7  ;;  %v109_v10 = vld [vmem:[%s350_s3 + $0x18] sm:$0xff]  ;;  %v207_v12 = vld [vmem:[%s349_s2] ss:$0 sm:$0xff]  ;;  %s277_s9 = smov [#allocation2]   ;;  %vm191_vm3 = vcmask 64512  }
   0x6   :  { %243 = vmatprep.subr.bf16.mxu1 %v274_v2  ;;  %v244_v11 = vpack.c.bf16 %v109_v10, %v108_v9  ;;  %v209_v17 = vld [vmem:[%s351_s4] ss:$0 sm:$0xff]  ;;  %s199_s10 = sshll.u32 %s277_s9, 4  ;;  %s200_s10 = int_to_ptr.vmem [resolvable:$true] %s199_s10 }
   0x7   :  { %224 = vmatmul.mubr.msk.f32.vlgmr.msra.gmra.mrb[0].mxu0 %vm31_vm1, %v21_v8  ;;  %s250_s3 = scalar_lea.vmem %s200_s10, 128  ;;  %p255_p1 = scmp.lt.s32.totalorder %s200_s10, %s200_s10 }
   0x8   :  { %p251_p0 = scmp.ne.s32.totalorder %s200_s10, %s250_s3  ;;  %p256_p2 = scmp.lt.s32.totalorder %s250_s3, %s250_s3 }
   0x9   :  { %245 = vmatpush3.bf16.msra.mxu1 %v244_v11 }
   0xa   :  { %p257_p3 = por %p256_p2, %p255_p1 }
   0xc   :  { %p258_p4 = pnand %p257_p3, %p251_p0 }
  0xda   :  { %v101_v13 = vpop.f32.mrb[0].mxu0 }
  0xdb   :  { %v102_v14 = vadd.f32 %v207_v12, %v101_v13  ;;  %v225_v15 = vpop.f32.mrb[1].mxu0 }
  0xdd   :  { %v105_v16 = vmax.f32 %v102_v14, 0.0 }
  0xdf   :  { %235 = vmatmul.mubr.msk.f32.vlgmr.msra.gmra.mrb[0].mxu1 %vm117_vm2, %v105_v16 }
 0x1b2   :  { %v187_v18 = vpop.f32.mrb[0].mxu1 }
 0x1b3   :  { %v188_v19 = vadd.f32 %v209_v17, %v187_v18  ;;  %v236_v20 = vpop.f32.mrb[1].mxu1 }
 0x1b5   :  { %192 = vst.msk [vmem:[#allocation2] sm:$0xff] %vm191_vm3, %v188_v19 }
 0x1b6   :  { %261 = shalt.err (!%p258_p4)
}
 0x1b7   :  { %s262_s12 = scalar_lea.hbm %s352_s5, 128 }
 0x1b8   :  { %p263_p5 = scmp.ne.s32.totalorder %s352_s5, %s262_s12  ;;  %p266_p6 = scmp.lt.u32.totalorder %s262_s12, %s352_s5 }
 0x1ba   :  { %p268_p7 = pnand %p266_p6, %p263_p5 }
 0x1bc   :  { %271 = shalt.err (!%p268_p7)
}
 0x1bd   :  { %202 = dma.vmem_to_hbm [thread:$0]  %s200_s10, 128, %s352_s5, [#allocation3]  }
 0x1be   :  { %272 = dma.done.wait [#allocation3], 128  }
 0x1bf   :  { %273 = vsyncadd [#allocation3], 4294967168 }
 0x1c0   :  { %206 = vsyncpa [#allocation3], 1 }

</bundles_post_ra>
